<compile_context>
chip_gen: v6e
topology: v6e:2x2x1
jax: 0.10.0
libtpu: 0.0.40
codegen_flags: <defaults>
</compile_context>

<pallas_src>
import jax
import jax.numpy as jnp
import numpy as np
from jax.experimental import pallas as pl
from jax.experimental.pallas import tpu as pltpu

NORM_EPS = 1e-5


def _round_up(a, b):
    return ((a + b - 1) // b) * b


def _vmem_capacity_bytes():
    try:
        return int(pltpu.get_tpu_info().vmem_capacity_bytes)
    except Exception:
        return 64 * 1024 * 1024  # conservative fallback (v7x per-TensorCore)


def _step_vmem_bytes(tr, W, Wo, Cin, Cout, in_bytes, out_bytes):
    """Per-grid-step VMEM working set, including (8,128) sublane/lane padding
    and double buffering of the pipelined blocks."""
    ts, tso = tr * 2 * W, tr * Wo
    b = 2 * _round_up(Cin, 8) * _round_up(ts, 128) * in_bytes        # x block   (x2)
    b += 2 * _round_up(Cout, 8) * _round_up(tso, 128) * out_bytes    # out block (x2)
    b += _round_up(Cout, 8) * _round_up(ts, 128) * 4                 # f32 conv intermediate
    b += 2 * _round_up(Cout, 8) * 128 * in_bytes                     # w_fused
    b += 2 * _round_up(W, 8) * _round_up(Wo, 128) * 4                # pw
    b += 2 * _round_up(Cout, 8) * 128 * 4                            # shift
    return b


def _pick_tile_rows(B, Ho, Wo, W, Cin, Cout, in_bytes, out_bytes, budget):
    """Output rows per grid step.  Constraints: divides Ho; block last dims are
    full-extent or multiples of 128; fits the VMEM budget.  Prefers >= 8 total
    grid steps (pipelining + v7x megacore) and <= 64 unrolled rows per step."""
    cands = [d for d in range(1, Ho + 1)
             if Ho % d == 0 and ((d * Wo) % 128 == 0 or d == Ho)]
    feasible = [d for d in cands
                if _step_vmem_bytes(d, W, Wo, Cin, Cout, in_bytes, out_bytes) <= budget]
    feasible = feasible or [min(cands)]
    capped = [d for d in feasible if d <= 64] or feasible
    good = [d for d in capped if B * (Ho // d) >= 8]
    return max(good) if good else max(capped)


def patch_embed(x_nchw, conv_w, gamma, beta, running_mean, running_var,
                *, compute_dtype=None):
    """PatchEmbed(in_ch, out_ch, stride=2) forward.  Returns (x_nchw_out, H, W).

    compute_dtype: optional narrower matmul-input dtype (e.g. jnp.bfloat16) that
    halves input HBM traffic; MXU accumulation stays f32.  Default keeps f32.
    """
    B, Cin, H, W = x_nchw.shape
    Cout = conv_w.shape[0]
    # TODO(synk): odd H/W (AvgPool2d ceil_mode=True + count_include_pad=False edge
    # windows) not implemented; even spatial dims only, as used in MedViT.
    assert H % 2 == 0 and W % 2 == 0
    Ho, Wo = H // 2, W // 2
    S, So = H * W, Ho * Wo

    in_dt = compute_dtype if compute_dtype is not None else x_nchw.dtype
    out_dt = x_nchw.dtype
    in_bytes = jnp.dtype(in_dt).itemsize
    out_bytes = jnp.dtype(out_dt).itemsize

    budget = max(8 * 1024 * 1024, _vmem_capacity_bytes() // 4)
    TR = _pick_tile_rows(B, Ho, Wo, W, Cin, Cout, in_bytes, out_bytes, budget)
    TS, TSo = TR * 2 * W, TR * Wo
    n_t = Ho // TR

    # Free (contiguous) view of the NCHW input -- no transpose / layout pass.
    x_flat = x_nchw.reshape(B, Cin, S).astype(in_dt)

    # Fold the BatchNorm scale and the 0.25 avg-pool factor into the tiny 1x1
    # conv weight; only the per-channel shift survives as a kernel epilogue add.
    scale = gamma * jax.lax.rsqrt(running_var + NORM_EPS)                 # (Cout,)
    shift = (beta - running_mean * scale).reshape(Cout, 1).astype(jnp.float32)
    w_fused = (conv_w.reshape(Cout, Cin) * (0.25 * scale)[:, None]).astype(in_dt)

    # W-direction pooling matrix: output lane wo sums lanes 2*wo and 2*wo+1.
    pw_np = np.zeros((W, Wo), np.float32)
    pw_np[2 * np.arange(Wo), np.arange(Wo)] = 1.0
    pw_np[2 * np.arange(Wo) + 1, np.arange(Wo)] = 1.0
    pw = jnp.asarray(pw_np)

    def kernel(x_ref, w_ref, pw_ref, shift_ref, o_ref):
        # 1x1 conv on the whole tile: channel-major MXU matmul, spatial on lanes.
        y = jnp.dot(w_ref[...], x_ref[...], preferred_element_type=jnp.float32)
        pwv = pw_ref[...]
        sh = shift_ref[...]
        for r in range(TR):                                   # static unroll over row pairs
            chunk = y[:, r * 2 * W:(r + 1) * 2 * W]           # (Cout, 2W): rows 2r, 2r+1
            hp = chunk[:, :W] + chunk[:, W:]                  # H-pool      (Cout, W)
            po = jnp.dot(hp, pwv, preferred_element_type=jnp.float32)   # W-pool (Cout, Wo)
            o_ref[:, pl.ds(r * Wo, Wo)] = (po + sh).astype(o_ref.dtype)

    vmem_need = _step_vmem_bytes(TR, W, Wo, Cin, Cout, in_bytes, out_bytes)
    vmem_limit = int(min(48 * 1024 * 1024, max(16 * 1024 * 1024, 2 * vmem_need)))

    out_flat = pl.pallas_call(
        kernel,
        out_shape=jax.ShapeDtypeStruct((B, Cout, So), out_dt),
        grid=(B, n_t),
        in_specs=[
            pl.BlockSpec((None, Cin, TS), lambda b, t: (b, 0, t)),   # NCHW input slab
            pl.BlockSpec((Cout, Cin), lambda b, t: (0, 0)),          # fused conv weight
            pl.BlockSpec((W, Wo), lambda b, t: (0, 0)),              # W-pool matrix
            pl.BlockSpec((Cout, 1), lambda b, t: (0, 0)),            # BN shift
        ],
        out_specs=pl.BlockSpec((None, Cout, TSo), lambda b, t: (b, 0, t)),
        compiler_params=pltpu.CompilerParams(
            dimension_semantics=("parallel", "parallel"),
            vmem_limit_bytes=vmem_limit),
    )(x_flat, w_fused, pw, shift)

    out = out_flat.reshape(B, Cout, Ho, Wo)                   # free view, NCHW already
    return out, Ho, Wo


def patch_embed_reference(x_nchw, conv_w, gamma, beta, running_mean, running_var):
    """Pure-JAX reference mirroring the PyTorch forward (BN in eval mode)."""
    B, Cin, H, W = x_nchw.shape
    Cout = conv_w.shape[0]
    Ho, Wo = H // 2, W // 2
    xr = x_nchw.reshape(B, Cin, Ho, 2, Wo, 2)
    pooled = xr.mean(axis=(3, 5))                                    # (B,Cin,Ho,Wo)
    w = conv_w.reshape(Cout, Cin)
    conv = jnp.einsum('bchw,oc->bohw', pooled, w)
    scale = gamma / jnp.sqrt(running_var + NORM_EPS)
    shift = beta - running_mean * scale
    out = conv * scale[None, :, None, None] + shift[None, :, None, None]
    return out, Ho, Wo


if __name__ == "__main__":
    B, Cin, H, W = 2, 8, 16, 16
    Cout = 32

    key = jax.random.PRNGKey(0)
    k_x, k_w, k_g, k_b, k_m, k_v = jax.random.split(key, 6)

    x = jax.random.normal(k_x, (B, Cin, H, W), dtype=jnp.float32)
    conv_w = jax.random.normal(k_w, (Cout, Cin, 1, 1), dtype=jnp.float32) * 0.1
    gamma = 1.0 + 0.1 * jax.random.normal(k_g, (Cout,), dtype=jnp.float32)
    beta = 0.1 * jax.random.normal(k_b, (Cout,), dtype=jnp.float32)
    running_mean = 0.1 * jax.random.normal(k_m, (Cout,), dtype=jnp.float32)
    running_var = jnp.abs(jax.random.normal(k_v, (Cout,), dtype=jnp.float32)) + 0.5

    ref, Ho_r, Wo_r = patch_embed_reference(
        x, conv_w, gamma, beta, running_mean, running_var)

    # f32 path (default): strict check against the f32 reference.
    out, Ho, Wo = patch_embed(x, conv_w, gamma, beta, running_mean, running_var)
    out = jax.block_until_ready(out)
    assert out.shape == (B, Cout, Ho, Wo)
    assert (Ho, Wo) == (Ho_r, Wo_r) == (H // 2, W // 2)
    np.testing.assert_allclose(np.asarray(out), np.asarray(ref),
                               rtol=1e-5, atol=1e-5)

    # bf16 compute path (production default per perf review): looser tolerance.
    out_bf, _, _ = patch_embed(x, conv_w, gamma, beta, running_mean, running_var,
                               compute_dtype=jnp.bfloat16)
    out_bf = jax.block_until_ready(out_bf)
    np.testing.assert_allclose(np.asarray(out_bf), np.asarray(ref),
                               rtol=5e-2, atol=5e-2)

    print("KERNEL_OK")
</pallas_src>

<mosaic_0001>
module attributes {stable_mosaic.version = 11 : i64} {
  func.func @kernel(%arg0: i32, %arg1: i32, %arg2: memref<1x8x256xf32, #tpu.memory_space<vmem>>, %arg3: memref<32x8xf32, #tpu.memory_space<vmem>>, %arg4: memref<16x8xf32, #tpu.memory_space<vmem>>, %arg5: memref<32x1xf32, #tpu.memory_space<vmem>>, %arg6: memref<1x32x64xf32, #tpu.memory_space<vmem>>) attributes {dimension_semantics = [#tpu.dimension_semantics<parallel>, #tpu.dimension_semantics<parallel>], iteration_bounds = array<i64: 2, 1>, scalar_prefetch = 0 : i64, scratch_operands = 0 : i64, tpu.core_type = #tpu.core_type<tc>, window_params = [{transform_indices = @transform_0, window_bounds = array<i64: 1, 8, 256>}, {pipeline_mode = #tpu.pipeline_mode<synchronous>, transform_indices = @transform_1, window_bounds = array<i64: 32, 8>}, {pipeline_mode = #tpu.pipeline_mode<synchronous>, transform_indices = @transform_2, window_bounds = array<i64: 16, 8>}, {pipeline_mode = #tpu.pipeline_mode<synchronous>, transform_indices = @transform_3, window_bounds = array<i64: 32, 1>}, {transform_indices = @transform_4, window_bounds = array<i64: 1, 32, 64>}]} {
    %c0 = arith.constant 0 : index
    %c0_0 = arith.constant 0 : index
    %0 = vector.load %arg3[%c0, %c0_0] : memref<32x8xf32, #tpu.memory_space<vmem>>, vector<32x8xf32>
    %c0_1 = arith.constant 0 : index
    %c0_2 = arith.constant 0 : index
    %c0_3 = arith.constant 0 : index
    %1 = vector.load %arg2[%c0_1, %c0_2, %c0_3] : memref<1x8x256xf32, #tpu.memory_space<vmem>>, vector<1x8x256xf32>
    %2 = vector.shape_cast %1 : vector<1x8x256xf32> to vector<8x256xf32>
    %cst = arith.constant dense<0.000000e+00> : vector<32x256xf32>
    %3 = tpu.matmul %0, %2, %cst {dimension_numbers = #tpu.dot_dimension_numbers<[1], [0], [0], [1], [0, 0, 1, 1], [], []>} : vector<32x8xf32>, vector<8x256xf32>, vector<32x256xf32> -> vector<32x256xf32>
    %c0_4 = arith.constant 0 : index
    %c0_5 = arith.constant 0 : index
    %4 = vector.load %arg4[%c0_4, %c0_5] : memref<16x8xf32, #tpu.memory_space<vmem>>, vector<16x8xf32>
    %c0_6 = arith.constant 0 : index
    %c0_7 = arith.constant 0 : index
    %5 = vector.load %arg5[%c0_6, %c0_7] : memref<32x1xf32, #tpu.memory_space<vmem>>, vector<32x1xf32>
    %6 = vector.extract_strided_slice %3 {offsets = [0, 0], sizes = [32, 32], strides = [1, 1]} : vector<32x256xf32> to vector<32x32xf32>
    %7 = vector.extract_strided_slice %6 {offsets = [0, 0], sizes = [32, 16], strides = [1, 1]} : vector<32x32xf32> to vector<32x16xf32>
    %8 = vector.extract_strided_slice %6 {offsets = [0, 16], sizes = [32, 16], strides = [1, 1]} : vector<32x32xf32> to vector<32x16xf32>
    %9 = arith.addf %7, %8 : vector<32x16xf32>
    %cst_8 = arith.constant dense<0.000000e+00> : vector<32x8xf32>
    %10 = tpu.matmul %9, %4, %cst_8 {dimension_numbers = #tpu.dot_dimension_numbers<[1], [0], [0], [1], [0, 0, 1, 1], [], []>} : vector<32x16xf32>, vector<16x8xf32>, vector<32x8xf32> -> vector<32x8xf32>
    %11 = vector.broadcast %5 : vector<32x1xf32> to vector<32x8xf32>
    %12 = arith.addf %10, %11 : vector<32x8xf32>
    %c0_9 = arith.constant 0 : index
    %c0_10 = arith.constant 0 : index
    %c0_11 = arith.constant 0 : index
    %13 = vector.load %arg6[%c0_9, %c0_10, %c0_11] : memref<1x32x64xf32, #tpu.memory_space<vmem>>, vector<1x32x8xf32>
    %14 = vector.shape_cast %13 : vector<1x32x8xf32> to vector<32x8xf32>
    %15 = vector.shape_cast %12 : vector<32x8xf32> to vector<1x32x8xf32>
    tpu.vector_store %arg6[%c0_9, %c0_10, %c0_11], %15 {strides = array<i32>} : memref<1x32x64xf32, #tpu.memory_space<vmem>>, vector<1x32x8xf32>,
    %16 = vector.extract_strided_slice %3 {offsets = [0, 32], sizes = [32, 32], strides = [1, 1]} : vector<32x256xf32> to vector<32x32xf32>
    %17 = vector.extract_strided_slice %16 {offsets = [0, 0], sizes = [32, 16], strides = [1, 1]} : vector<32x32xf32> to vector<32x16xf32>
    %18 = vector.extract_strided_slice %16 {offsets = [0, 16], sizes = [32, 16], strides = [1, 1]} : vector<32x32xf32> to vector<32x16xf32>
    %19 = arith.addf %17, %18 : vector<32x16xf32>
    %cst_12 = arith.constant dense<0.000000e+00> : vector<32x8xf32>
    %20 = tpu.matmul %19, %4, %cst_12 {dimension_numbers = #tpu.dot_dimension_numbers<[1], [0], [0], [1], [0, 0, 1, 1], [], []>} : vector<32x16xf32>, vector<16x8xf32>, vector<32x8xf32> -> vector<32x8xf32>
    %21 = vector.broadcast %5 : vector<32x1xf32> to vector<32x8xf32>
    %22 = arith.addf %20, %21 : vector<32x8xf32>
    %c0_13 = arith.constant 0 : index
    %c0_14 = arith.constant 0 : index
    %c8 = arith.constant 8 : index
    %23 = vector.load %arg6[%c0_13, %c0_14, %c8] : memref<1x32x64xf32, #tpu.memory_space<vmem>>, vector<1x32x8xf32>
    %24 = vector.shape_cast %23 : vector<1x32x8xf32> to vector<32x8xf32>
    %25 = vector.shape_cast %22 : vector<32x8xf32> to vector<1x32x8xf32>
    tpu.vector_store %arg6[%c0_13, %c0_14, %c8], %25 {strides = array<i32>} : memref<1x32x64xf32, #tpu.memory_space<vmem>>, vector<1x32x8xf32>,
    %26 = vector.extract_strided_slice %3 {offsets = [0, 64], sizes = [32, 32], strides = [1, 1]} : vector<32x256xf32> to vector<32x32xf32>
    %27 = vector.extract_strided_slice %26 {offsets = [0, 0], sizes = [32, 16], strides = [1, 1]} : vector<32x32xf32> to vector<32x16xf32>
    %28 = vector.extract_strided_slice %26 {offsets = [0, 16], sizes = [32, 16], strides = [1, 1]} : vector<32x32xf32> to vector<32x16xf32>
    %29 = arith.addf %27, %28 : vector<32x16xf32>
    %cst_15 = arith.constant dense<0.000000e+00> : vector<32x8xf32>
    %30 = tpu.matmul %29, %4, %cst_15 {dimension_numbers = #tpu.dot_dimension_numbers<[1], [0], [0], [1], [0, 0, 1, 1], [], []>} : vector<32x16xf32>, vector<16x8xf32>, vector<32x8xf32> -> vector<32x8xf32>
    %31 = vector.broadcast %5 : vector<32x1xf32> to vector<32x8xf32>
    %32 = arith.addf %30, %31 : vector<32x8xf32>
    %c0_16 = arith.constant 0 : index
    %c0_17 = arith.constant 0 : index
    %c16 = arith.constant 16 : index
    %33 = vector.load %arg6[%c0_16, %c0_17, %c16] : memref<1x32x64xf32, #tpu.memory_space<vmem>>, vector<1x32x8xf32>
    %34 = vector.shape_cast %33 : vector<1x32x8xf32> to vector<32x8xf32>
    %35 = vector.shape_cast %32 : vector<32x8xf32> to vector<1x32x8xf32>
    tpu.vector_store %arg6[%c0_16, %c0_17, %c16], %35 {strides = array<i32>} : memref<1x32x64xf32, #tpu.memory_space<vmem>>, vector<1x32x8xf32>,
    %36 = vector.extract_strided_slice %3 {offsets = [0, 96], sizes = [32, 32], strides = [1, 1]} : vector<32x256xf32> to vector<32x32xf32>
    %37 = vector.extract_strided_slice %36 {offsets = [0, 0], sizes = [32, 16], strides = [1, 1]} : vector<32x32xf32> to vector<32x16xf32>
    %38 = vector.extract_strided_slice %36 {offsets = [0, 16], sizes = [32, 16], strides = [1, 1]} : vector<32x32xf32> to vector<32x16xf32>
    %39 = arith.addf %37, %38 : vector<32x16xf32>
    %cst_18 = arith.constant dense<0.000000e+00> : vector<32x8xf32>
    %40 = tpu.matmul %39, %4, %cst_18 {dimension_numbers = #tpu.dot_dimension_numbers<[1], [0], [0], [1], [0, 0, 1, 1], [], []>} : vector<32x16xf32>, vector<16x8xf32>, vector<32x8xf32> -> vector<32x8xf32>
    %41 = vector.broadcast %5 : vector<32x1xf32> to vector<32x8xf32>
    %42 = arith.addf %40, %41 : vector<32x8xf32>
    %c0_19 = arith.constant 0 : index
    %c0_20 = arith.constant 0 : index
    %c24 = arith.constant 24 : index
    %43 = vector.load %arg6[%c0_19, %c0_20, %c24] : memref<1x32x64xf32, #tpu.memory_space<vmem>>, vector<1x32x8xf32>
    %44 = vector.shape_cast %43 : vector<1x32x8xf32> to vector<32x8xf32>
    %45 = vector.shape_cast %42 : vector<32x8xf32> to vector<1x32x8xf32>
    tpu.vector_store %arg6[%c0_19, %c0_20, %c24], %45 {strides = array<i32>} : memref<1x32x64xf32, #tpu.memory_space<vmem>>, vector<1x32x8xf32>,
    %46 = vector.extract_strided_slice %3 {offsets = [0, 128], sizes = [32, 32], strides = [1, 1]} : vector<32x256xf32> to vector<32x32xf32>
    %47 = vector.extract_strided_slice %46 {offsets = [0, 0], sizes = [32, 16], strides = [1, 1]} : vector<32x32xf32> to vector<32x16xf32>
    %48 = vector.extract_strided_slice %46 {offsets = [0, 16], sizes = [32, 16], strides = [1, 1]} : vector<32x32xf32> to vector<32x16xf32>
    %49 = arith.addf %47, %48 : vector<32x16xf32>
    %cst_21 = arith.constant dense<0.000000e+00> : vector<32x8xf32>
    %50 = tpu.matmul %49, %4, %cst_21 {dimension_numbers = #tpu.dot_dimension_numbers<[1], [0], [0], [1], [0, 0, 1, 1], [], []>} : vector<32x16xf32>, vector<16x8xf32>, vector<32x8xf32> -> vector<32x8xf32>
    %51 = vector.broadcast %5 : vector<32x1xf32> to vector<32x8xf32>
    %52 = arith.addf %50, %51 : vector<32x8xf32>
    %c0_22 = arith.constant 0 : index
    %c0_23 = arith.constant 0 : index
    %c32 = arith.constant 32 : index
    %53 = vector.load %arg6[%c0_22, %c0_23, %c32] : memref<1x32x64xf32, #tpu.memory_space<vmem>>, vector<1x32x8xf32>
    %54 = vector.shape_cast %53 : vector<1x32x8xf32> to vector<32x8xf32>
    %55 = vector.shape_cast %52 : vector<32x8xf32> to vector<1x32x8xf32>
    tpu.vector_store %arg6[%c0_22, %c0_23, %c32], %55 {strides = array<i32>} : memref<1x32x64xf32, #tpu.memory_space<vmem>>, vector<1x32x8xf32>,
    %56 = vector.extract_strided_slice %3 {offsets = [0, 160], sizes = [32, 32], strides = [1, 1]} : vector<32x256xf32> to vector<32x32xf32>
    %57 = vector.extract_strided_slice %56 {offsets = [0, 0], sizes = [32, 16], strides = [1, 1]} : vector<32x32xf32> to vector<32x16xf32>
    %58 = vector.extract_strided_slice %56 {offsets = [0, 16], sizes = [32, 16], strides = [1, 1]} : vector<32x32xf32> to vector<32x16xf32>
    %59 = arith.addf %57, %58 : vector<32x16xf32>
    %cst_24 = arith.constant dense<0.000000e+00> : vector<32x8xf32>
    %60 = tpu.matmul %59, %4, %cst_24 {dimension_numbers = #tpu.dot_dimension_numbers<[1], [0], [0], [1], [0, 0, 1, 1], [], []>} : vector<32x16xf32>, vector<16x8xf32>, vector<32x8xf32> -> vector<32x8xf32>
    %61 = vector.broadcast %5 : vector<32x1xf32> to vector<32x8xf32>
    %62 = arith.addf %60, %61 : vector<32x8xf32>
    %c0_25 = arith.constant 0 : index
    %c0_26 = arith.constant 0 : index
    %c40 = arith.constant 40 : index
    %63 = vector.load %arg6[%c0_25, %c0_26, %c40] : memref<1x32x64xf32, #tpu.memory_space<vmem>>, vector<1x32x8xf32>
    %64 = vector.shape_cast %63 : vector<1x32x8xf32> to vector<32x8xf32>
    %65 = vector.shape_cast %62 : vector<32x8xf32> to vector<1x32x8xf32>
    tpu.vector_store %arg6[%c0_25, %c0_26, %c40], %65 {strides = array<i32>} : memref<1x32x64xf32, #tpu.memory_space<vmem>>, vector<1x32x8xf32>,
    %66 = vector.extract_strided_slice %3 {offsets = [0, 192], sizes = [32, 32], strides = [1, 1]} : vector<32x256xf32> to vector<32x32xf32>
    %67 = vector.extract_strided_slice %66 {offsets = [0, 0], sizes = [32, 16], strides = [1, 1]} : vector<32x32xf32> to vector<32x16xf32>
    %68 = vector.extract_strided_slice %66 {offsets = [0, 16], sizes = [32, 16], strides = [1, 1]} : vector<32x32xf32> to vector<32x16xf32>
    %69 = arith.addf %67, %68 : vector<32x16xf32>
    %cst_27 = arith.constant dense<0.000000e+00> : vector<32x8xf32>
    %70 = tpu.matmul %69, %4, %cst_27 {dimension_numbers = #tpu.dot_dimension_numbers<[1], [0], [0], [1], [0, 0, 1, 1], [], []>} : vector<32x16xf32>, vector<16x8xf32>, vector<32x8xf32> -> vector<32x8xf32>
    %71 = vector.broadcast %5 : vector<32x1xf32> to vector<32x8xf32>
    %72 = arith.addf %70, %71 : vector<32x8xf32>
    %c0_28 = arith.constant 0 : index
    %c0_29 = arith.constant 0 : index
    %c48 = arith.constant 48 : index
    %73 = vector.load %arg6[%c0_28, %c0_29, %c48] : memref<1x32x64xf32, #tpu.memory_space<vmem>>, vector<1x32x8xf32>
    %74 = vector.shape_cast %73 : vector<1x32x8xf32> to vector<32x8xf32>
    %75 = vector.shape_cast %72 : vector<32x8xf32> to vector<1x32x8xf32>
    tpu.vector_store %arg6[%c0_28, %c0_29, %c48], %75 {strides = array<i32>} : memref<1x32x64xf32, #tpu.memory_space<vmem>>, vector<1x32x8xf32>,
    %76 = vector.extract_strided_slice %3 {offsets = [0, 224], sizes = [32, 32], strides = [1, 1]} : vector<32x256xf32> to vector<32x32xf32>
    %77 = vector.extract_strided_slice %76 {offsets = [0, 0], sizes = [32, 16], strides = [1, 1]} : vector<32x32xf32> to vector<32x16xf32>
    %78 = vector.extract_strided_slice %76 {offsets = [0, 16], sizes = [32, 16], strides = [1, 1]} : vector<32x32xf32> to vector<32x16xf32>
    %79 = arith.addf %77, %78 : vector<32x16xf32>
    %cst_30 = arith.constant dense<0.000000e+00> : vector<32x8xf32>
    %80 = tpu.matmul %79, %4, %cst_30 {dimension_numbers = #tpu.dot_dimension_numbers<[1], [0], [0], [1], [0, 0, 1, 1], [], []>} : vector<32x16xf32>, vector<16x8xf32>, vector<32x8xf32> -> vector<32x8xf32>
    %81 = vector.broadcast %5 : vector<32x1xf32> to vector<32x8xf32>
    %82 = arith.addf %80, %81 : vector<32x8xf32>
    %c0_31 = arith.constant 0 : index
    %c0_32 = arith.constant 0 : index
    %c56 = arith.constant 56 : index
    %83 = vector.load %arg6[%c0_31, %c0_32, %c56] : memref<1x32x64xf32, #tpu.memory_space<vmem>>, vector<1x32x8xf32>
    %84 = vector.shape_cast %83 : vector<1x32x8xf32> to vector<32x8xf32>
    %85 = vector.shape_cast %82 : vector<32x8xf32> to vector<1x32x8xf32>
    tpu.vector_store %arg6[%c0_31, %c0_32, %c56], %85 {strides = array<i32>} : memref<1x32x64xf32, #tpu.memory_space<vmem>>, vector<1x32x8xf32>,
    return
  }
  func.func @transform_0(%arg0: i32, %arg1: i32) -> (i32, i32, i32) {
    %c0_i32 = arith.constant 0 : i32
    %c0_i32_0 = arith.constant 0 : i32
    return %arg0, %c0_i32, %arg1 : i32, i32, i32
  }
  func.func @transform_1(%arg0: i32, %arg1: i32) -> (i32, i32) {
    %c0_i32 = arith.constant 0 : i32
    %c0_i32_0 = arith.constant 0 : i32
    %c0_i32_1 = arith.constant 0 : i32
    return %c0_i32, %c0_i32_0 : i32, i32
  }
  func.func @transform_2(%arg0: i32, %arg1: i32) -> (i32, i32) {
    %c0_i32 = arith.constant 0 : i32
    %c0_i32_0 = arith.constant 0 : i32
    %c0_i32_1 = arith.constant 0 : i32
    return %c0_i32, %c0_i32_0 : i32, i32
  }
  func.func @transform_3(%arg0: i32, %arg1: i32) -> (i32, i32) {
    %c0_i32 = arith.constant 0 : i32
    %c0_i32_0 = arith.constant 0 : i32
    %c0_i32_1 = arith.constant 0 : i32
    return %c0_i32, %c0_i32_0 : i32, i32
  }
  func.func @transform_4(%arg0: i32, %arg1: i32) -> (i32, i32, i32) {
    %c0_i32 = arith.constant 0 : i32
    %c0_i32_0 = arith.constant 0 : i32
    return %arg0, %c0_i32, %arg1 : i32, i32, i32
  }
}

</mosaic_0001>

<bundles_post_ra>
// kernel: tpu_custom_call.1
= control target key start
LH: loop header
LB: loop body
LE: loop exit
PB: predicated region body
PF: predicated region fallthrough
CT: control target
= control target key end

     0   :  { %9 = vsyncpa [#allocation3], 0  ;;  %s2161_s0 = inlined_call_operand.vmem [shape: f32[2,8,256], index: 0, kind: input, shape index: {}]   ;;  %s2162_s1 = inlined_call_operand.vmem [shape: f32[32,8], index: 1, kind: input, shape index: {}]   ;;  %s2163_s2 = inlined_call_operand.vmem [shape: f32[16,8], index: 2, kind: input, shape index: {}]   ;;  %s2164_s3 = inlined_call_operand.vmem [shape: f32[32,1], index: 3, kind: input, shape index: {}]   ;;  %s2165_s4 = inlined_call_operand.hbm [shape: f32[2,32,64], index: 4, kind: output, shape index: {}]  }
   0x1   :  { %11 = vsyncpa [#allocation3 + $0x1], 0  ;;  %s1811_s15 = smov 0   ;;  %s1813_s16 = smov 0  }
   0x2   :  { %s1815_s17 = smov 0   ;;  %s1817_s18 = smov 0  }
   0x3   :  { %s1819_s19 = smov 0   ;;  %s1821_s20 = smov 0  }
   0x4 LB: > { %s1445_s21 = sadd.s32 4294967295, %s1770_s20   ;;  %s1446_s22 = sadd.s32 4294967294, %s1770_s20   ;;  %s1770_s20 = sphi %s1821_s20, %s17_s20   ;;  %s1766_s19 = sphi %s1819_s19, %s2172_s19   ;;  %s1762_s18 = sphi %s1817_s18, %s2171_s18   ;;  %s1758_s17 = sphi %s1815_s17, %s2170_s17   ;;  %s1754_s16 = sphi %s1813_s16, %s2169_s16   ;;  %s1750_s15 = sphi %s1811_s15, %s2168_s15  }
   0x5   : > { %s29_s23 = sadd.s32 1, %s1766_s19  ;;  %s129_s24 = sadd.s32 1, %s1758_s17 }
   0x6   : > { %p31_p0 = scmp.ge.s32.totalorder %s29_s23, 2  ;;  %p139_p1 = scmp.ne.s32.totalorder %s1758_s17, %s1754_s16 }
   0x7   : > { %p140_p2 = scmp.eq.s32.totalorder %s1445_s21, 1  ;;  %p145_p3 = scmp.ne.s32.totalorder %s1754_s16, %s1750_s15 }
   0x8   : > { %s2174_s23 = smov (%p31_p0, %s29_s23), 0  ;;  %p146_p5 = scmp.eq.s32.totalorder %s1446_s22, 1 }
   0x9   : > { %p1851_p4 = por %p140_p2, %p139_p1  ;;  %s124_s26 = ssub.s32 %s1766_s19, %s2174_s23 }
   0xa   : > { %p1449_p6 = scmp.ge.s32.totalorder %s1770_s20, 1  ;;  %p127_p7 = scmp.eq.s32.totalorder %s124_s26, 0 }
   0xb   : > { %p1858_p8 = por %p146_p5, %p145_p3  ;;  %p186_p9 = scmp.lt.s32.totalorder %s1770_s20, 3 }
   0xc   : > { %s1864_s28 = scalar_select %p127_p7, %s1758_s17, %s129_s24  }
   0xd   : > { %p187_p10 = pnand %p1449_p6, %p186_p9 }
   0xe   : > { %p217_p11 = scmp.lt.s32.totalorder (!%p187_p10), %s1762_s18, 1  ;;  %s1775_s5 = smov (!%p187_p10), 96  }
   0xf   : > { %190 = sbr.rel (%p187_p10) target bundleno = 847 (0x34f), region = 36  ;;  %s1776_s6 = smov (!%p187_p10), 64  }
  0x10   : > { %s213_s22 = sand.u32 (!%p187_p10), 1, %s1754_s16   ;;  %s1782_s8 = smov (!%p187_p10), 48  }
  0x11   : > { %s1450_s24 = sshll.u32 (!%p187_p10), %s213_s22, 5  ;;  %s1495_s9 = sshll.u32 (!%p187_p10), %s1762_s18, 9 }
  0x12   : > { %s2023_s26 = scalar_lea.vmem (!%p187_p10), [#allocation2], %s1450_s24  ;;  %s2107_s13 = scalar_lea.hbm (!%p187_p10), %s2165_s4, %s1495_s9 }
  0x13   : > { %s1367_s10 = sshll.u32 (!%p187_p10), %s2023_s26, 4  ;;  %s2115_s14 = scalar_lea.sflag (!%p187_p10), [#allocation3], %s213_s22  ;;  %s2110_s10 = int_to_ptr.vmem [resolvable:$true] %s1367_s10 }
  0x14   : > { %v1772_v0 = vmov 0.0   ;;  %s218_s29 = scalar_select %p217_p11, %s1762_s18, 1  ;;  %v226_v3 = vld [vmem:[%s2162_s1] sm:$0xff]  ;;  %vm232_vm0 = vcmask 64512   ;;  %v227_v4 = vld [vmem:[%s2162_s1 + $0x8] sm:$0xff]  ;;  %v228_v5 = vld [vmem:[%s2162_s1 + $0x10] sm:$0xff] }
  0x15   : > { %309 = vmatprep.mubr.f32.mxu0 %v1772_v0  ;;  %v229_v6 = vld [vmem:[%s2162_s1 + $0x18] sm:$0xff]  ;;  %v1890_v7 = vld [vmem:[%s2163_s2 + $0x8] sm:$0xff]  ;;  %v1899_v8 = vld [vmem:[%s2163_s2] sm:$0xff]  ;;  %v1774_v17 = vmov 0   ;;  %vm380_vm1 = vcmask 130048   ;;  %vm599_vm2 = vcmask 130112  }
  0x16   : > { %s1494_s30 = sshll.u32 %s218_s29, 4  ;;  %1544 = vmatprep.subr.mxu1 %v1890_v7  ;;  %1693 = vset.pattern.permute.xlu1 %v1774_v17  ;;  %v336_v34 = vld [vmem:[%s2164_s3] sm:$0xff]  ;;  %v339_v35 = vld [vmem:[%s2164_s3 + $0x18] sm:$0xff]  ;;  %v337_v36 = vld [vmem:[%s2164_s3 + $0x8] sm:$0xff]  ;;  %s1778_s29 = smov 8   ;;  %vm721_vm3 = vcmask 195712  }
  0x17   : > { %s224_s7 = scalar_lea.vmem %s2161_s0, %s1494_s30  ;;  %1545 = vmatpush3.msra.mxu1 %v1890_v7  ;;  %s1773_s30 = smov 112   ;;  %1692 = vset.pattern.permute.xlu0 %v1774_v17  ;;  %v338_v37 = vld [vmem:[%s2164_s3 + $0x10] sm:$0xff]  ;;  %vm843_vm4 = vcmask 261312   ;;  %vm981_vm5 = vcmask 326912   ;;  %vm1103_vm6 = vcmask 392512   ;;  %vm1225_vm7 = vcmask 458112  }
  0x18   : > { %v231_v1 = vld [vmem:[%s224_s7 + $0x8] sm:$0xff]  ;;  %v230_v2 = vld [vmem:[%s224_s7] sm:$0xff]  ;;  %1546 = vmatprep.subr.mxu1 %v1899_v8  ;;  %s1777_s7 = smov 32   ;;  %vm1347_vm8 = vcmask 523712   ;;  %s1694_s18 = scalar_lea.vmem %s2110_s10, 512 }
  0x19   : > { %275 = vmatprep.subr.mxu0 %v231_v1  ;;  %1547 = vmatpush3.msra.mxu1 %v1899_v8  ;;  %p1695_p12 = scmp.ne.s32.totalorder %s2110_s10, %s1694_s18  ;;  %s1784_s21 = smov [#allocation2]  }
  0x1a   : > { %276 = vmatpush1.msra.mxu0 %v230_v2  ;;  %1554 = vmatprep.subr.mxu1 %v1890_v7  ;;  %s1698_s24 = sshll.u32 %s1784_s21, 4  ;;  %s1699_s24 = int_to_ptr.vmem [resolvable:$false] %s1698_s24 }
  0x1b   : > { %1453 = vmatmul.mubr.msk.f32.vlgmr.msra.gmra.mxu0 %vm232_vm0, %v226_v3  ;;  %1564 = vmatprep.subr.mxu0 %v1890_v7  ;;  %p1696_p13 = pnand %p1695_p12, %p1851_p4  ;;  %p1701_p1 = scmp.lt.s32.totalorder %s2110_s10, %s1699_s24 }
  0x1c   : > { %315 = vmatprep.mubr.f32.mxu0 %v1772_v0  ;;  %1565 = vmatpush3.msra.mxu0 %v1890_v7 }
  0x1d   : > { %1566 = vmatprep.subr.mxu0 %v1899_v8  ;;  %p1697_p0 = pneg %p1696_p13 }
  0x1e   : > { %1567 = vmatpush3.msra.mxu0 %v1899_v8 }
  0x1f   : > { %1454 = vmatmul.mubr.msk.f32.gmra.mxu0 %vm232_vm0, %v227_v4  ;;  %1584 = vmatprep.subr.mxu0 %v1890_v7 }
  0x20   : > { %321 = vmatprep.mubr.f32.mxu0 %v1772_v0 }
  0x23   : > { %1455 = vmatmul.mubr.msk.f32.gmra.mxu0 %vm232_vm0, %v228_v5 }
  0x24   : > { %327 = vmatprep.mubr.f32.mxu0 %v1772_v0 }
  0x27   : > { %1456 = vmatmul.mubr.msk.f32.gmra.mxu0 %vm232_vm0, %v229_v6 }
  0xdb   : > { %v311_v9 = vpop.f32.mrf.mxu0 }
  0xdc   : > { %344 = vrot.lane.b32.xlu0 %v311_v9, %s1773_s30 }
  0xdd   : > { %v313_v10 = vpop.f32.mrf.mxu0 }
  0xdf   : > { %v317_v11 = vpop.f32.mrf.mxu0 }
  0xe0   : > { %346 = vrot.lane.b32.xlu0 %v317_v11, %s1773_s30 }
  0xe1   : > { %v319_v12 = vpop.f32.mrf.mxu0 }
  0xe3   : > { %v323_v13 = vpop.f32.mrf.mxu0 }
  0xe4   : > { %852 = vrot.lane.b32.xlu0 %v313_v10, %s1773_s30  ;;  %348 = vrot.lane.b32.xlu1 %v323_v13, %s1773_s30 }
  0xe5   : > { %v325_v14 = vpop.f32.mrf.mxu0 }
  0xe7   : > { %v329_v15 = vpop.f32.mrf.mxu0 }
  0xe8   : > { %856 = vrot.lane.b32.xlu0 %v325_v14, %s1773_s30  ;;  %350 = vrot.lane.b32.xlu1 %v329_v15, %s1773_s30 }
  0xe9   : > { %v331_v16 = vpop.f32.mrf.mxu0 }
  0xec   : > { %854 = vrot.lane.b32.xlu1 %v319_v12, %s1773_s30 }
  0xf0   : > { %858 = vrot.lane.b32.xlu1 %v331_v16, %s1773_s30  ;;  %s1779_s30 = smov 16  }
 0x14e   : > { %v345_v18 = vpop.permute.xlu0 %344 }
 0x14f   : > { %v356_v19 = vadd.f32 %v345_v18, %v311_v9 }
 0x151   : > { %1548 = vmatprep.mubr.msk.f32.mxu1 %vm380_vm1, %v356_v19  ;;  %482 = vrot.lane.b32.xlu0 %v356_v19, %s1775_s5 }
 0x152   : > { %v347_v20 = vpop.permute.xlu0 %346 }
 0x153   : > { %v357_v21 = vadd.f32 %v347_v20, %v317_v11 }
 0x155   : > { %1549 = vmatmul.mubr.msk.f32.vlgmr.msra.gmra.mxu1 %vm380_vm1, %v357_v21  ;;  %604 = vrot.lane.b32.xlu0 %v356_v19, %s1776_s6 }
 0x156   : > { %484 = vrot.lane.b32.xlu1 %v357_v21, %s1775_s5  ;;  %v349_v22 = vpop.permute.xlu1 %348  ;;  %1555 = vmatpush3.msra.mxu1 %v1890_v7  ;;  %v853_v24 = vpop.permute.xlu0 %852 }
 0x157   : > { %v358_v23 = vadd.f32 %v349_v22, %v323_v13  ;;  %1556 = vmatprep.subr.mxu1 %v1899_v8  ;;  %v1919_v26 = vadd.f32 %v853_v24, %v313_v10 }
 0x158   : > { %1557 = vmatpush3.msra.mxu1 %v1899_v8 }
 0x159   : > { %1551 = vmatprep.mubr.msk.f32.mxu1 %vm380_vm1, %v358_v23  ;;  %726 = vrot.lane.b32.xlu0 %v356_v19, %s1777_s7 }
 0x15a   : > { %606 = vrot.lane.b32.xlu1 %v357_v21, %s1776_s6  ;;  %v351_v25 = vpop.permute.xlu1 %350  ;;  %1574 = vmatprep.subr.mxu1 %v1890_v7  ;;  %v857_v30 = vpop.permute.xlu0 %856 }
 0x15b   : > { %v359_v27 = vadd.f32 %v351_v25, %v329_v15  ;;  %v866_v31 = vadd.f32 %v857_v30, %v325_v14 }
 0x15d   : > { %986 = vrot.lane.b32.xlu0 %v1919_v26, %s1775_s5  ;;  %1552 = vmatmul.mubr.msk.f32.gmra.mxu1 %vm380_vm1, %v359_v27 }
 0x15e   : > { %728 = vrot.lane.b32.xlu1 %v357_v21, %s1777_s7  ;;  %v855_v28 = vpop.permute.xlu1 %854 }
 0x15f   : > { %v1925_v29 = vadd.f32 %v855_v28, %v319_v12 }
 0x161   : > { %1108 = vrot.lane.b32.xlu0 %v1919_v26, %s1776_s6 }
 0x162   : > { %988 = vrot.lane.b32.xlu1 %v1925_v29, %s1775_s5  ;;  %v859_v32 = vpop.permute.xlu1 %858 }
 0x163   : > { %v1944_v33 = vadd.f32 %v859_v32, %v331_v16 }
 0x165   : > { %486 = vrot.lane.b32.xlu0 %v358_v23, %s1775_s5 }
 0x166   : > { %1110 = vrot.lane.b32.xlu1 %v1925_v29, %s1776_s6 }
 0x169   : > { %608 = vrot.lane.b32.xlu0 %v358_v23, %s1776_s6 }
 0x16a   : > { %488 = vrot.lane.b32.xlu1 %v359_v27, %s1775_s5 }
 0x16d   : > { %730 = vrot.lane.b32.xlu0 %v358_v23, %s1777_s7 }
 0x16e   : > { %610 = vrot.lane.b32.xlu1 %v359_v27, %s1776_s6 }
 0x171   : > { %1230 = vrot.lane.b32.xlu0 %v1919_v26, %s1777_s7 }
 0x172   : > { %732 = vrot.lane.b32.xlu1 %v359_v27, %s1777_s7 }
 0x175   : > { %990 = vrot.lane.b32.xlu0 %v866_v31, %s1775_s5 }
 0x176   : > { %1232 = vrot.lane.b32.xlu1 %v1925_v29, %s1777_s7 }
 0x179   : > { %1112 = vrot.lane.b32.xlu0 %v866_v31, %s1776_s6 }
 0x17a   : > { %992 = vrot.lane.b32.xlu1 %v1944_v33, %s1775_s5  ;;  %s1780_s5 = smov 24  }
 0x17d   : > { %1234 = vrot.lane.b32.xlu0 %v866_v31, %s1777_s7 }
 0x17e   : > { %1114 = vrot.lane.b32.xlu1 %v1944_v33, %s1776_s6  ;;  %s1781_s6 = smov 40  }
 0x181   : > { %362 = vperm.xlu0 %1692, %v336_v34  }
 0x182   : > { %1236 = vrot.lane.b32.xlu1 %v1944_v33, %s1777_s7 }
 0x185   : > { %377 = vperm.xlu0 %1692, %v339_v35  }
 0x186   : > { %367 = vperm.xlu1 %1693, %v337_v36  }
 0x18a   : > { %372 = vperm.xlu1 %1693, %v338_v37  }
 0x1c3   : > { %v483_v38 = vpop.permute.xlu0 %482 }
 0x1c4   : > { %1558 = vmatprep.mubr.msk.f32.mxu1 %vm380_vm1, %v483_v38 }
 0x1c7   : > { %v605_v39 = vpop.permute.xlu0 %604 }
 0x1c8   : > { %v485_v40 = vpop.permute.xlu1 %484  ;;  %1568 = vmatprep.mubr.msk.f32.mxu0 %vm380_vm1, %v605_v39 }
 0x1c9   : > { %1559 = vmatmul.mubr.msk.f32.vlgmr.msra.gmra.mxu1 %vm380_vm1, %v485_v40 }
 0x1ca   : > { %1575 = vmatpush3.msra.mxu1 %v1890_v7 }
 0x1cb   : > { %v727_v41 = vpop.permute.xlu0 %726  ;;  %1576 = vmatprep.subr.mxu1 %v1899_v8 }
 0x1cc   : > { %v607_v42 = vpop.permute.xlu1 %606  ;;  %1577 = vmatpush3.msra.mxu1 %v1899_v8 }
 0x1cd   : > { %1569 = vmatmul.mubr.msk.f32.vlgmr.msra.gmra.mxu0 %vm380_vm1, %v607_v42  ;;  %1594 = vmatprep.subr.mxu1 %v1890_v7 }
 0x1ce   : > { %1585 = vmatpush3.msra.mxu0 %v1890_v7 }
 0x1cf   : > { %v987_v43 = vpop.permute.xlu0 %986  ;;  %1586 = vmatprep.subr.mxu0 %v1899_v8 }
 0x1d0   : > { %v729_v44 = vpop.permute.xlu1 %728  ;;  %1587 = vmatpush3.msra.mxu0 %v1899_v8 }
 0x1d1   : > { %1604 = vmatprep.subr.mxu0 %v1890_v7 }
 0x1d3   : > { %v1109_v45 = vpop.permute.xlu0 %1108 }
 0x1d4   : > { %v989_v46 = vpop.permute.xlu1 %988 }
 0x1d7   : > { %v487_v47 = vpop.permute.xlu0 %486 }
 0x1d8   : > { %v1111_v48 = vpop.permute.xlu1 %1110  ;;  %1561 = vmatprep.mubr.msk.f32.mxu1 %vm380_vm1, %v487_v47 }
 0x1db   : > { %v609_v49 = vpop.permute.xlu0 %608 }
 0x1dc   : > { %v489_v50 = vpop.permute.xlu1 %488  ;;  %1571 = vmatprep.mubr.msk.f32.mxu0 %vm380_vm1, %v609_v49 }
 0x1dd   : > { %1562 = vmatmul.mubr.msk.f32.gmra.mxu1 %vm380_vm1, %v489_v50 }
 0x1de   : > { %1578 = vmatprep.mubr.msk.f32.mxu1 %vm380_vm1, %v727_v41 }
 0x1df   : > { %v731_v51 = vpop.permute.xlu0 %730 }
 0x1e0   : > { %v611_v52 = vpop.permute.xlu1 %610 }
 0x1e1   : > { %1572 = vmatmul.mubr.msk.f32.gmra.mxu0 %vm380_vm1, %v611_v52  ;;  %1579 = vmatmul.mubr.msk.f32.vlgmr.msra.gmra.mxu1 %vm380_vm1, %v729_v44 }
 0x1e2   : > { %1581 = vmatprep.mubr.msk.f32.mxu1 %vm380_vm1, %v731_v51  ;;  %1588 = vmatprep.mubr.msk.f32.mxu0 %vm380_vm1, %v1919_v26 }
 0x1e3   : > { %v1231_v53 = vpop.permute.xlu0 %1230  ;;  %1595 = vmatpush3.msra.mxu1 %v1890_v7 }
 0x1e4   : > { %v733_v54 = vpop.permute.xlu1 %732  ;;  %1596 = vmatprep.subr.mxu1 %v1899_v8 }
 0x1e5   : > { %1582 = vmatmul.mubr.msk.f32.gmra.mxu1 %vm380_vm1, %v733_v54  ;;  %1589 = vmatmul.mubr.msk.f32.vlgmr.msra.gmra.mxu0 %vm380_vm1, %v1925_v29 }
 0x1e6   : > { %1591 = vmatprep.mubr.msk.f32.mxu0 %vm380_vm1, %v866_v31  ;;  %1598 = vmatprep.mubr.msk.f32.mxu1 %vm380_vm1, %v987_v43 }
 0x1e7   : > { %v991_v55 = vpop.permute.xlu0 %990  ;;  %1597 = vmatpush3.msra.mxu1 %v1899_v8  ;;  %1605 = vmatpush3.msra.mxu0 %v1890_v7 }
 0x1e8   : > { %v1233_v56 = vpop.permute.xlu1 %1232  ;;  %1606 = vmatprep.subr.mxu0 %v1899_v8  ;;  %1614 = vmatprep.subr.mxu1 %v1890_v7 }
 0x1e9   : > { %1592 = vmatmul.mubr.msk.f32.gmra.mxu0 %vm380_vm1, %v1944_v33  ;;  %1599 = vmatmul.mubr.msk.f32.vlgmr.msra.gmra.mxu1 %vm380_vm1, %v989_v46 }
 0x1ea   : > { %1601 = vmatprep.mubr.msk.f32.mxu1 %vm380_vm1, %v991_v55  ;;  %1608 = vmatprep.mubr.msk.f32.mxu0 %vm380_vm1, %v1109_v45 }
 0x1eb   : > { %v1113_v57 = vpop.permute.xlu0 %1112  ;;  %1607 = vmatpush3.msra.mxu0 %v1899_v8  ;;  %1615 = vmatpush3.msra.mxu1 %v1890_v7 }
 0x1ec   : > { %v993_v58 = vpop.permute.xlu1 %992  ;;  %1616 = vmatprep.subr.mxu1 %v1899_v8 }
 0x1ed   : > { %1602 = vmatmul.mubr.msk.f32.gmra.mxu1 %vm380_vm1, %v993_v58  ;;  %1609 = vmatmul.mubr.msk.f32.vlgmr.msra.gmra.mxu0 %vm380_vm1, %v1111_v48 }
 0x1ee   : > { %1611 = vmatprep.mubr.msk.f32.mxu0 %vm380_vm1, %v1113_v57  ;;  %1618 = vmatprep.mubr.msk.f32.mxu1 %vm380_vm1, %v1231_v53 }
 0x1ef   : > { %v1235_v59 = vpop.permute.xlu0 %1234  ;;  %1617 = vmatpush3.msra.mxu1 %v1899_v8 }
 0x1f0   : > { %v1115_v60 = vpop.permute.xlu1 %1114 }
 0x1f1   : > { %1612 = vmatmul.mubr.msk.f32.gmra.mxu0 %vm380_vm1, %v1115_v60  ;;  %1619 = vmatmul.mubr.msk.f32.vlgmr.msra.gmra.mxu1 %vm380_vm1, %v1233_v56 }
 0x1f2   : > { %1621 = vmatprep.mubr.msk.f32.mxu1 %vm380_vm1, %v1235_v59 }
 0x1f4   : > { %v1237_v61 = vpop.permute.xlu1 %1236 }
 0x1f5   : > { %1622 = vmatmul.mubr.msk.f32.gmra.mxu1 %vm380_vm1, %v1237_v61 }
 0x1fc   : > { %v2020_v0 = vpop.permute.xlu0 %362 }
 0x200   : > { %v2030_v4 = vpop.permute.xlu0 %377 }
 0x201   : > { %v2018_v62 = vpop.permute.xlu1 %367 }
 0x205   : > { %v2032_v6 = vpop.permute.xlu1 %372 }
 0x215   : > { %v1550_v63 = vpop.f32.mrf.mxu1 }
 0x216   : > { %v465_v1 = vadd.f32 %v1550_v63, %v2018_v62 }
 0x217   : > { %v459_v2 = vpop.f32.mrf.mxu1 }
 0x218   : > { %479 = vst.msk [vmem:[%s2023_s26 + $0x8] sm:$0xff] %vm232_vm0, %v465_v1  ;;  %v460_v3 = vadd.f32 %v459_v2, %v2020_v0 }
 0x21a   : > { %478 = vst.msk [vmem:[%s2023_s26] sm:$0xff] %vm232_vm0, %v460_v3 }
 0x21d   : > { %v1553_v5 = vpop.f32.mrf.mxu1 }
 0x21e   : > { %v475_v7 = vadd.f32 %v1553_v5, %v2030_v4 }
 0x21f   : > { %v469_v8 = vpop.f32.mrf.mxu1 }
 0x220   : > { %481 = vst.msk [vmem:[%s2023_s26 + $0x18] sm:$0xff] %vm232_vm0, %v475_v7  ;;  %v470_v9 = vadd.f32 %v469_v8, %v2032_v6 }
 0x222   : > { %480 = vst.msk [vmem:[%s2023_s26 + $0x10] sm:$0xff] %vm232_vm0, %v470_v9 }
 0x289   : > { %v1560_v10 = vpop.f32.mrf.mxu1 }
 0x28a   : > { %v570_v11 = vadd.f32 %v1560_v10, %v2018_v62 }
 0x28b   : > { %v564_v12 = vpop.f32.mrf.mxu1 }
 0x28c   : > { %v565_v13 = vadd.f32 %v564_v12, %v2020_v0  ;;  %589 = vrot.lane.b32.xlu0 %v570_v11, %s1778_s29 }
 0x28d   : > { %v1570_v14 = vpop.f32.mrf.mxu0 }
 0x28e   : > { %v692_v15 = vadd.f32 %v1570_v14, %v2018_v62  ;;  %587 = vrot.lane.b32.xlu1 %v565_v13, %s1778_s29 }
 0x28f   : > { %v686_v16 = vpop.f32.mrf.mxu0 }
 0x290   : > { %v687_v17 = vadd.f32 %v686_v16, %v2020_v0  ;;  %711 = vrot.lane.b32.xlu0 %v692_v15, %s1779_s30 }
 0x292   : > { %709 = vrot.lane.b32.xlu1 %v687_v17, %s1779_s30 }
 0x29d   : > { %v1563_v18 = vpop.f32.mrf.mxu1 }
 0x29e   : > { %v580_v19 = vadd.f32 %v1563_v18, %v2030_v4 }
 0x29f   : > { %v574_v20 = vpop.f32.mrf.mxu1 }
 0x2a0   : > { %v575_v21 = vadd.f32 %v574_v20, %v2032_v6  ;;  %593 = vrot.lane.b32.xlu0 %v580_v19, %s1778_s29 }
 0x2a1   : > { %v1573_v22 = vpop.f32.mrf.mxu0  ;;  %v1580_v23 = vpop.f32.mrf.mxu1 }
 0x2a2   : > { %v702_v24 = vadd.f32 %v1573_v22, %v2030_v4  ;;  %591 = vrot.lane.b32.xlu1 %v575_v21, %s1778_s29  ;;  %v814_v30 = vadd.f32 %v1580_v23, %v2018_v62 }
 0x2a3   : > { %v696_v25 = vpop.f32.mrf.mxu0  ;;  %v808_v26 = vpop.f32.mrf.mxu1 }
 0x2a4   : > { %v697_v27 = vadd.f32 %v696_v25, %v2032_v6  ;;  %715 = vrot.lane.b32.xlu0 %v702_v24, %s1779_s30  ;;  %v809_v31 = vadd.f32 %v808_v26, %v2020_v0 }
 0x2a5   : > { %v1583_v28 = vpop.f32.mrf.mxu1  ;;  %v1590_v29 = vpop.f32.mrf.mxu0 }
 0x2a6   : > { %713 = vrot.lane.b32.xlu1 %v697_v27, %s1779_s30  ;;  %v952_v34 = vadd.f32 %v1590_v29, %v2018_v62  ;;  %v824_v38 = vadd.f32 %v1583_v28, %v2030_v4  ;;  %s1700_s30 = scalar_lea.vmem %s1699_s24, 1024 }
 0x2a7   : > { %v818_v32 = vpop.f32.mrf.mxu1  ;;  %v946_v33 = vpop.f32.mrf.mxu0  ;;  %p1702_p2 = scmp.lt.s32.totalorder %s1700_s30, %s1694_s18 }
 0x2a8   : > { %833 = vrot.lane.b32.xlu0 %v814_v30, %s1780_s5  ;;  %v947_v35 = vadd.f32 %v946_v33, %v2020_v0  ;;  %v819_v39 = vadd.f32 %v818_v32, %v2032_v6 }
 0x2a9   : > { %v1593_v36 = vpop.f32.mrf.mxu0  ;;  %v1600_v37 = vpop.f32.mrf.mxu1  ;;  %p1703_p3 = por %p1702_p2, %p1701_p1 }
 0x2aa   : > { %831 = vrot.lane.b32.xlu1 %v809_v31, %s1780_s5  ;;  %v962_v42 = vadd.f32 %v1593_v36, %v2030_v4  ;;  %v1074_v46 = vadd.f32 %v1600_v37, %v2018_v62 }
 0x2ab   : > { %v956_v40 = vpop.f32.mrf.mxu0  ;;  %v1068_v41 = vpop.f32.mrf.mxu1  ;;  %p1704_p5 = pnand %p1703_p3, %p1697_p0 }
 0x2ac   : > { %971 = vrot.lane.b32.xlu0 %v952_v34, %s1777_s7  ;;  %v957_v43 = vadd.f32 %v956_v40, %v2032_v6  ;;  %v1069_v47 = vadd.f32 %v1068_v41, %v2020_v0 }
 0x2ad   : > { %v1603_v44 = vpop.f32.mrf.mxu1  ;;  %v1610_v45 = vpop.f32.mrf.mxu0 }
 0x2ae   : > { %969 = vrot.lane.b32.xlu1 %v947_v35, %s1777_s7  ;;  %v1196_v50 = vadd.f32 %v1610_v45, %v2018_v62  ;;  %v1084_v54 = vadd.f32 %v1603_v44, %v2030_v4 }
 0x2af   : > { %v1078_v48 = vpop.f32.mrf.mxu1  ;;  %v1190_v49 = vpop.f32.mrf.mxu0 }
 0x2b0   : > { %837 = vrot.lane.b32.xlu0 %v824_v38, %s1780_s5  ;;  %v1191_v51 = vadd.f32 %v1190_v49, %v2020_v0  ;;  %v1079_v55 = vadd.f32 %v1078_v48, %v2032_v6 }
 0x2b1   : > { %v1613_v52 = vpop.f32.mrf.mxu0  ;;  %v1620_v53 = vpop.f32.mrf.mxu1 }
 0x2b2   : > { %835 = vrot.lane.b32.xlu1 %v819_v39, %s1780_s5  ;;  %v1206_v58 = vadd.f32 %v1613_v52, %v2030_v4  ;;  %v1318_v61 = vadd.f32 %v1620_v53, %v2018_v62 }
 0x2b3   : > { %v1200_v56 = vpop.f32.mrf.mxu0  ;;  %v1312_v57 = vpop.f32.mrf.mxu1 }
 0x2b4   : > { %975 = vrot.lane.b32.xlu0 %v962_v42, %s1777_s7  ;;  %v1201_v59 = vadd.f32 %v1200_v56, %v2032_v6  ;;  %v1313_v63 = vadd.f32 %v1312_v57, %v2020_v0 }
 0x2b5   : > { %v1623_v60 = vpop.f32.mrf.mxu1 }
 0x2b6   : > { %973 = vrot.lane.b32.xlu1 %v957_v43, %s1777_s7  ;;  %s1783_s7 = smov 56   ;;  %v1328_v2 = vadd.f32 %v1623_v60, %v2030_v4 }
 0x2b7   : > { %v1322_v1 = vpop.f32.mrf.mxu1 }
 0x2b8   : > { %1093 = vrot.lane.b32.xlu0 %v1074_v46, %s1781_s6  ;;  %v1323_v3 = vadd.f32 %v1322_v1, %v2032_v6 }
 0x2ba   : > { %1091 = vrot.lane.b32.xlu1 %v1069_v47, %s1781_s6 }
 0x2bc   : > { %1215 = vrot.lane.b32.xlu0 %v1196_v50, %s1782_s8 }
 0x2be   : > { %1213 = vrot.lane.b32.xlu1 %v1191_v51, %s1782_s8 }
 0x2c0   : > { %1097 = vrot.lane.b32.xlu0 %v1084_v54, %s1781_s6 }
 0x2c2   : > { %1095 = vrot.lane.b32.xlu1 %v1079_v55, %s1781_s6 }
 0x2c4   : > { %1219 = vrot.lane.b32.xlu0 %v1206_v58, %s1782_s8 }
 0x2c6   : > { %1217 = vrot.lane.b32.xlu1 %v1201_v59, %s1782_s8 }
 0x2c8   : > { %1337 = vrot.lane.b32.xlu0 %v1318_v61, %s1783_s7 }
 0x2ca   : > { %1335 = vrot.lane.b32.xlu1 %v1313_v63, %s1783_s7 }
 0x2cc   : > { %1341 = vrot.lane.b32.xlu0 %v1328_v2, %s1783_s7 }
 0x2ce   : > { %1339 = vrot.lane.b32.xlu1 %v1323_v3, %s1783_s7 }
 0x2fe   : > { %v590_v62 = vpop.permute.xlu0 %589 }
 0x2ff   : > { %601 = vst.msk [vmem:[%s2023_s26 + $0x8] sm:$0xff] %vm599_vm2, %v590_v62 }
 0x300   : > { %v588_v0 = vpop.permute.xlu1 %587 }
 0x301   : > { %600 = vst.msk [vmem:[%s2023_s26] sm:$0xff] %vm599_vm2, %v588_v0 }
 0x302   : > { %v712_v5 = vpop.permute.xlu0 %711 }
 0x303   : > { %723 = vst.msk [vmem:[%s2023_s26 + $0x8] sm:$0xff] %vm721_vm3, %v712_v5 }
 0x304   : > { %v710_v4 = vpop.permute.xlu1 %709 }
 0x305   : > { %722 = vst.msk [vmem:[%s2023_s26] sm:$0xff] %vm721_vm3, %v710_v4 }
 0x312   : > { %v594_v7 = vpop.permute.xlu0 %593 }
 0x313   : > { %603 = vst.msk [vmem:[%s2023_s26 + $0x18] sm:$0xff] %vm599_vm2, %v594_v7 }
 0x314   : > { %v592_v6 = vpop.permute.xlu1 %591 }
 0x315   : > { %602 = vst.msk [vmem:[%s2023_s26 + $0x10] sm:$0xff] %vm599_vm2, %v592_v6 }
 0x316   : > { %v716_v8 = vpop.permute.xlu0 %715 }
 0x317   : > { %725 = vst.msk [vmem:[%s2023_s26 + $0x18] sm:$0xff] %vm721_vm3, %v716_v8 }
 0x318   : > { %v714_v9 = vpop.permute.xlu1 %713 }
 0x319   : > { %724 = vst.msk [vmem:[%s2023_s26 + $0x10] sm:$0xff] %vm721_vm3, %v714_v9 }
 0x31a   : > { %v834_v10 = vpop.permute.xlu0 %833 }
 0x31b   : > { %845 = vst.msk [vmem:[%s2023_s26 + $0x8] sm:$0xff] %vm843_vm4, %v834_v10 }
 0x31c   : > { %v832_v11 = vpop.permute.xlu1 %831 }
 0x31d   : > { %844 = vst.msk [vmem:[%s2023_s26] sm:$0xff] %vm843_vm4, %v832_v11 }
 0x31e   : > { %v972_v12 = vpop.permute.xlu0 %971 }
 0x31f   : > { %983 = vst.msk [vmem:[%s2023_s26 + $0x8] sm:$0xff] %vm981_vm5, %v972_v12 }
 0x320   : > { %v970_v13 = vpop.permute.xlu1 %969 }
 0x321   : > { %982 = vst.msk [vmem:[%s2023_s26] sm:$0xff] %vm981_vm5, %v970_v13 }
 0x322   : > { %v838_v14 = vpop.permute.xlu0 %837 }
 0x323   : > { %847 = vst.msk [vmem:[%s2023_s26 + $0x18] sm:$0xff] %vm843_vm4, %v838_v14 }
 0x324   : > { %v836_v15 = vpop.permute.xlu1 %835 }
 0x325   : > { %846 = vst.msk [vmem:[%s2023_s26 + $0x10] sm:$0xff] %vm843_vm4, %v836_v15 }
 0x326   : > { %v976_v16 = vpop.permute.xlu0 %975 }
 0x327   : > { %985 = vst.msk [vmem:[%s2023_s26 + $0x18] sm:$0xff] %vm981_vm5, %v976_v16 }
 0x328   : > { %v974_v17 = vpop.permute.xlu1 %973 }
 0x329   : > { %984 = vst.msk [vmem:[%s2023_s26 + $0x10] sm:$0xff] %vm981_vm5, %v974_v17 }
 0x32a   : > { %v1094_v18 = vpop.permute.xlu0 %1093 }
 0x32b   : > { %1105 = vst.msk [vmem:[%s2023_s26 + $0x8] sm:$0xff] %vm1103_vm6, %v1094_v18 }
 0x32c   : > { %v1092_v19 = vpop.permute.xlu1 %1091 }
 0x32d   : > { %1104 = vst.msk [vmem:[%s2023_s26] sm:$0xff] %vm1103_vm6, %v1092_v19 }
 0x32e   : > { %v1216_v20 = vpop.permute.xlu0 %1215 }
 0x32f   : > { %1227 = vst.msk [vmem:[%s2023_s26 + $0x8] sm:$0xff] %vm1225_vm7, %v1216_v20 }
 0x330   : > { %v1214_v21 = vpop.permute.xlu1 %1213 }
 0x331   : > { %1226 = vst.msk [vmem:[%s2023_s26] sm:$0xff] %vm1225_vm7, %v1214_v21 }
 0x332   : > { %v1098_v22 = vpop.permute.xlu0 %1097 }
 0x333   : > { %1107 = vst.msk [vmem:[%s2023_s26 + $0x18] sm:$0xff] %vm1103_vm6, %v1098_v22 }
 0x334   : > { %v1096_v23 = vpop.permute.xlu1 %1095 }
 0x335   : > { %1106 = vst.msk [vmem:[%s2023_s26 + $0x10] sm:$0xff] %vm1103_vm6, %v1096_v23 }
 0x336   : > { %v1220_v24 = vpop.permute.xlu0 %1219 }
 0x337   : > { %1229 = vst.msk [vmem:[%s2023_s26 + $0x18] sm:$0xff] %vm1225_vm7, %v1220_v24 }
 0x338   : > { %v1218_v25 = vpop.permute.xlu1 %1217 }
 0x339   : > { %1228 = vst.msk [vmem:[%s2023_s26 + $0x10] sm:$0xff] %vm1225_vm7, %v1218_v25 }
 0x33a   : > { %v1338_v26 = vpop.permute.xlu0 %1337 }
 0x33b   : > { %1349 = vst.msk [vmem:[%s2023_s26 + $0x8] sm:$0xff] %vm1347_vm8, %v1338_v26 }
 0x33c   : > { %v1336_v27 = vpop.permute.xlu1 %1335 }
 0x33d   : > { %1348 = vst.msk [vmem:[%s2023_s26] sm:$0xff] %vm1347_vm8, %v1336_v27 }
 0x33e   : > { %v1342_v28 = vpop.permute.xlu0 %1341 }
 0x33f   : > { %1351 = vst.msk [vmem:[%s2023_s26 + $0x18] sm:$0xff] %vm1347_vm8, %v1342_v28 }
 0x340   : > { %v1340_v29 = vpop.permute.xlu1 %1339 }
 0x341   : > { %1350 = vst.msk [vmem:[%s2023_s26 + $0x10] sm:$0xff] %vm1347_vm8, %v1340_v29 }
 0x342   : > { %1707 = shalt.err (!%p1704_p5)
}
 0x343   : > { %s1708_s22 = scalar_lea.hbm %s2107_s13, 512  ;;  %s1712_s6 = scalar_lea.hbm %s2165_s4, 1024 }
 0x344   : > { %p1709_p6 = scmp.ne.s32.totalorder %s2107_s13, %s1708_s22  ;;  %p1713_p10 = scmp.lt.s32.totalorder %s2107_s13, %s2165_s4 }
 0x345   : > { %p1714_p11 = scmp.lt.s32.totalorder %s1712_s6, %s1708_s22 }
 0x346   : > { %p1710_p7 = pnand %p1709_p6, %p1851_p4 }
 0x347   : > { %p1715_p12 = por %p1714_p11, %p1713_p10 }
 0x348   : > { %p1711_p9 = pneg %p1710_p7 }
 0x34a   : > { %p1716_p13 = pnand %p1715_p12, %p1711_p9 }
 0x34c   : > { %1719 = shalt.err (!%p1716_p13)
}
 0x34d   : > { %s1785_s9 = smov 128  }
 0x34e   : > { %1624 = dma.vmem_to_hbm [thread:$0]  (%p1851_p4), %s2110_s10, 512, %s2107_s13, %s2115_s14, %s1785_s9, %s1785_s9, %s1778_s29  }
 0x34f PF: > { %p1630_p0 = scmp.ge.s32.totalorder %s1770_s20, 2  ;;  %s1382_s11 = sand.u32 1, %s1750_s15  }
 0x350   : > { %s1383_s12 = scalar_lea.sflag [#allocation3], %s1382_s11 }
 0x351   : > { %p1627_p1 = pnand %p1630_p0, %p1858_p8 }
 0x353   : > { %p1628_p2 = pneg %p1627_p1 }
 0x355   : > { %1745 = dma.done.wait (%p1628_p2), %s1383_s12, 512  }
 0x356   : > { %1747 = vsyncadd (%p1628_p2), %s1383_s12, 4294966784  ;;  %s17_s20 = sadd.s32 1, %s1770_s20   ;;  %s2168_s15 = smov %s1754_s16 }
 0x357   : > { %p14_p3 = scmp.ge.s32.totalorder %s17_s20, 4   ;;  %s2169_s16 = smov %s1758_s17 }
 0x358   : > { %s2170_s17 = smov %s1864_s28  ;;  %s2171_s18 = smov %s1766_s19 }
 0x359   : > { %s2172_s19 = smov %s2174_s23  ;;  %16 = sbr.rel (!%p14_p3) target bundleno = 4 (0x4), region = 71 }
 0x35e   :  { %1388 = vsyncpa [#allocation3], 1 }
 0x35f   :  { %1390 = vsyncpa [#allocation3 + $0x1], 1 }

</bundles_post_ra>
